<compile_context>
chip_gen: v7x
topology: tpu7x:2x2x1
jax: 0.10.0
libtpu: 0.0.40
codegen_flags: <defaults>
</compile_context>

<pallas_src>
import functools

import jax
import jax.numpy as jnp
import numpy as np
from jax.experimental import pallas as pl
from jax.experimental.pallas import tpu as pltpu

FUSE_EPS = 1e-4   # Fusion_CBAM.epsilon (fusion-weight normalisation epsilon)
BN_EPS = 1e-5     # nn.BatchNorm2d default eps

_VMEM_LIMIT = 48 * 1024 * 1024     # compiler VMEM cap (safe on v7x's 64 MiB/TC)
_TILE_BUDGET = 24 * 1024 * 1024    # double-buffered per-step streaming budget


# ---------------------------------------------------------------------------
# kernels
# ---------------------------------------------------------------------------
def _up_kernel(x1f_ref, x0f_ref, e_ref, w_ref, b_ref, fw_ref, of_ref):
    # x1f_ref: (1, Cin, S)       native dtype, S = TH1*W1 conv-input spatial of tile
    # x0f_ref: (1, Cout, 4*S)    native dtype, flattened x0 tile (lane-dense)
    # e_ref  : (S, 4*S)          bf16, one-hot nearest-2x expand (W and H combined)
    # w_ref  : (Cout, Cin)       conv1x1 weight with BN scale folded in
    # b_ref  : (Cout, 1) f32     conv bias + BN shift folded in
    # fw_ref : (2,) f32 SMEM     pre-normalised fusion weights (w0, w1)
    # of_ref : (1, Cout, 4*S)    out dtype (= x0.dtype), flattened output tile
    f32 = jnp.float32
    w0 = fw_ref[0]
    w1 = fw_ref[1]

    # conv1x1 + folded BN + ReLU (MXU, f32 accumulate)
    x = x1f_ref[0]                                                 # (Cin, S)
    y = jnp.dot(w_ref[...], x, preferred_element_type=f32)        # (Cout, S)
    y = jnp.maximum(y + b_ref[...], 0.0)

    # nearest-2x in both H and W == one matmul against the resident one-hot
    # expand matrix; the result is already in the flattened output layout.
    up = jnp.dot(y.astype(e_ref.dtype), e_ref[...],
                 preferred_element_type=f32)                      # (Cout, 4*S)

    x0v = x0f_ref[0].astype(f32)                                   # one dense load
    of_ref[0, :, :] = (w0 * x0v + w1 * up).astype(of_ref.dtype)    # one dense store


def _down_kernel(x1f_ref, x1h_ref, x0f_ref, w_ref, b_ref, fw_ref, of_ref, y_scr,
                 *, TH, W1):
    # x1f_ref: (1, Cin, RH*W1)   native dtype, conv-input rows of this tile (flat)
    # x1h_ref: (1, Cin, HB, W1)  native dtype, halo block; row 0 = conv row RH*(i+1)
    # x0f_ref: (1, Cout, TH*W)   native dtype, flattened x0 tile (lane-dense)
    # of_ref : (1, Cout, TH*W)   out dtype (= x0.dtype), flattened output tile
    # y_scr  : VMEM (Cout, (RH+1)*W1 + 128) f32 staging buffer
    f32 = jnp.float32
    RH = 2 * TH            # conv rows per tile
    RU = RH + 1            # + one halo row
    W = W1 // 2            # pooled width
    M = RU * W
    w0 = fw_ref[0]
    w1 = fw_ref[1]

    # conv1x1 + folded BN + ReLU on the RH-row slab (MXU, f32 accumulate)
    x = x1f_ref[0]                                                 # (Cin, RH*W1)
    y = jnp.dot(w_ref[...], x, preferred_element_type=f32)        # (Cout, RH*W1)
    y = jnp.maximum(y + b_ref[...], 0.0)

    # conv of the one-row bottom halo; zeroed on the last row-tile (== SAME
    # bottom zero-pad, safe because y >= 0 after the ReLU)
    xh = x1h_ref[0, :, 0, :]                                       # (Cin, W1)
    yh = jnp.dot(w_ref[...], xh, preferred_element_type=f32)
    yh = jnp.maximum(yh + b_ref[...], 0.0)
    is_last = (pl.program_id(1) == pl.num_programs(1) - 1).astype(f32)
    yh = yh * (1.0 - is_last)

    # stage RH+1 conv rows contiguously: two dense stores, no memset, no per-row loop
    y_scr[:, :RH * W1] = y
    y_scr[:, RH * W1:RU * W1] = yh

    # 3x3 / stride-2 max pool, W direction, all RU rows at once: three
    # lane-strided reads; the third tap of the last pooled column of each row is
    # the SAME right pad -> masked to 0 (also hides the 1-element over-read).
    c0 = y_scr[:, pl.ds(0, M, stride=2)]
    c1 = y_scr[:, pl.ds(1, M, stride=2)]
    c2 = y_scr[:, pl.ds(2, M, stride=2)]
    lane = jax.lax.broadcasted_iota(jnp.int32, c2.shape, 1)
    c2 = jnp.where(lane % W == W - 1, 0.0, c2)
    mw = jnp.maximum(jnp.maximum(c0, c1), c2)                      # (Cout, RU*W)

    # H direction + weighted fusion; x0 loaded once (dense), bounded unroll (TH<=16)
    x0v = x0f_ref[0].astype(f32)                                   # (Cout, TH*W)
    for t in range(TH):
        m = jnp.maximum(jnp.maximum(mw[:, (2 * t) * W:(2 * t + 1) * W],
                                    mw[:, (2 * t + 1) * W:(2 * t + 2) * W]),
                        mw[:, (2 * t + 2) * W:(2 * t + 3) * W])
        of_ref[0, :, t * W:(t + 1) * W] = (
            w0 * x0v[:, t * W:(t + 1) * W] + w1 * m).astype(of_ref.dtype)


# ---------------------------------------------------------------------------
# helpers
# ---------------------------------------------------------------------------
def _pick_rows(nrows, step_mult, lanes_per_row, bytes_per_row, budget, max_rows):
    """Largest divisor T of nrows with T % step_mult == 0, lane-aligned blocks
    (T*lanes_per_row % 128 == 0 or T == nrows), T <= max_rows and within the
    per-step VMEM budget; falls back to the smallest aligned divisor."""
    cands = [t for t in range(step_mult, nrows + 1, step_mult)
             if nrows % t == 0
             and ((t * lanes_per_row) % 128 == 0 or t == nrows)]
    if not cands:
        return nrows
    ok = [t for t in cands if t <= max_rows and t * bytes_per_row <= budget]
    return max(ok) if ok else min(cands)


def _expand_matrix(TH1, W1):
    """One-hot (S, 4*S) matrix mapping conv-row-major (TH1, W1) spatial positions
    to the flattened (2*TH1, 2*W1) nearest-2x-upsampled positions."""
    S = TH1 * W1
    W = 2 * W1
    src_r = np.arange(S) // W1
    src_v = np.arange(S) % W1
    dst = np.arange(4 * S)
    dst_r = (dst // W) // 2
    dst_v = (dst % W) // 2
    e = ((src_r[:, None] == dst_r[None, :]) &
         (src_v[:, None] == dst_v[None, :])).astype(np.float32)
    return jnp.asarray(e, dtype=jnp.bfloat16)     # 0/1 exactly representable


# ---------------------------------------------------------------------------
# wrapper
# ---------------------------------------------------------------------------
def fusion_forward(x0, x1, params, sample_type):
    """x0: (N, Cout, H, W); x1: (N, Cin, H1, W1). Returns (N, Cout, H, W) x0.dtype."""
    f32 = jnp.float32
    N, Cout, H, W = x0.shape
    _, Cin, H1, W1 = x1.shape
    out_dtype = x0.dtype
    isz = x1.dtype.itemsize
    x0sz = x0.dtype.itemsize

    # Fold inference-mode BatchNorm into the 1x1 conv; weights match x1's dtype
    # so the conv matmul runs with homogeneous (bf16 or f32) MXU operands.
    s = params["bn_gamma"] / jnp.sqrt(params["bn_var"] + BN_EPS)
    w_f = (s[:, None] * params["conv_w"]).astype(x1.dtype)                   # (Cout, Cin)
    b_f = (s * (params["conv_b"] - params["bn_mean"]) + params["bn_beta"])
    b_f = b_f.astype(f32)[:, None]                                           # (Cout, 1)

    # Normalised fusion weights computed once here (SMEM scalars in the kernel).
    wr = jnp.maximum(params["fuse_w"].astype(f32), 0.0)
    fw = wr / (jnp.sum(wr) + FUSE_EPS)                                       # (2,)

    # Metadata-only reshapes (row-major): lane-dense flattened spatial views.
    x0f = x0.reshape(N, Cout, H * W)

    comp = pltpu.CompilerParams(
        dimension_semantics=("parallel", "parallel"),
        vmem_limit_bytes=_VMEM_LIMIT,
    )

    if sample_type == "upsample":
        assert H == 2 * H1 and W == 2 * W1
        # per-conv-row double-buffered bytes: x1 row + x0 tile rows + out tile rows
        bpr = 2 * (Cin * W1 * isz + 2 * Cout * 4 * W1 * x0sz)
        TH1 = _pick_rows(H1, 1, W1, bpr, _TILE_BUDGET,
                         max_rows=max(1, 512 // max(W1, 1)))  # caps expand matrix size
        nt = H1 // TH1
        S = TH1 * W1
        x1f = x1.reshape(N, Cin, H1 * W1)
        expand = _expand_matrix(TH1, W1)                      # (S, 4*S), resident

        out = pl.pallas_call(
            _up_kernel,
            out_shape=jax.ShapeDtypeStruct((N, Cout, H * W), out_dtype),
            grid=(N, nt),
            in_specs=[
                pl.BlockSpec((1, Cin, S), lambda n, i: (n, 0, i)),
                pl.BlockSpec((1, Cout, 4 * S), lambda n, i: (n, 0, i)),
                pl.BlockSpec((S, 4 * S), lambda n, i: (0, 0)),
                pl.BlockSpec((Cout, Cin), lambda n, i: (0, 0)),
                pl.BlockSpec((Cout, 1), lambda n, i: (0, 0)),
                pl.BlockSpec(memory_space=pltpu.MemorySpace.SMEM),
            ],
            out_specs=pl.BlockSpec((1, Cout, 4 * S), lambda n, i: (n, 0, i)),
            compiler_params=comp,
        )(x1f, x0f, expand, w_f, b_f, fw)
        return out.reshape(N, Cout, H, W)

    elif sample_type == "downsample":
        assert H1 == 2 * H and W1 == 2 * W
        assert H % 4 == 0, "downsample tiling needs the output height % 4 == 0"
        # halo block sublane depth: 16 when possible (packed-dtype safe), else 8
        HB = 16 if H % 8 == 0 else 8
        bpr = 2 * (Cin * 2 * W1 * isz + 2 * Cout * W * x0sz) + Cout * 2 * W1 * 4
        TH = _pick_rows(H, HB // 2, W, bpr, _TILE_BUDGET, max_rows=16)
        nt = H // TH
        RH = 2 * TH
        RU = RH + 1
        x1f = x1.reshape(N, Cin, H1 * W1)
        kernel = functools.partial(_down_kernel, TH=TH, W1=W1)

        def halo_map(n, i):
            # HB-row block whose first row is conv-input row RH*(i+1) (the one-row
            # bottom halo of tile i); clamped on the last tile (zeroed in-kernel).
            return (n, 0, jnp.minimum((RH // HB) * (i + 1), H1 // HB - 1), 0)

        out = pl.pallas_call(
            kernel,
            out_shape=jax.ShapeDtypeStruct((N, Cout, H * W), out_dtype),
            grid=(N, nt),
            in_specs=[
                pl.BlockSpec((1, Cin, RH * W1), lambda n, i: (n, 0, i)),
                pl.BlockSpec((1, Cin, HB, W1), halo_map),
                pl.BlockSpec((1, Cout, TH * W), lambda n, i: (n, 0, i)),
                pl.BlockSpec((Cout, Cin), lambda n, i: (0, 0)),
                pl.BlockSpec((Cout, 1), lambda n, i: (0, 0)),
                pl.BlockSpec(memory_space=pltpu.MemorySpace.SMEM),
            ],
            out_specs=pl.BlockSpec((1, Cout, TH * W), lambda n, i: (n, 0, i)),
            scratch_shapes=[pltpu.VMEM((Cout, RU * W1 + 128), f32)],
            compiler_params=comp,
        )(x1f, x1, x0f, w_f, b_f, fw)
        return out.reshape(N, Cout, H, W)

    else:
        raise ValueError(f"unknown sample_type: {sample_type}")


# ---------------------------------------------------------------------------
# pure-JAX reference (mirrors the PyTorch forward, inference-mode BN)
# ---------------------------------------------------------------------------
def fusion_reference(x0, x1, params, sample_type):
    w = jnp.maximum(params["fuse_w"], 0.0)
    w = w / (jnp.sum(w) + FUSE_EPS)
    y = jnp.einsum("oi,nihw->nohw", params["conv_w"], x1) \
        + params["conv_b"][None, :, None, None]
    s = params["bn_gamma"] / jnp.sqrt(params["bn_var"] + BN_EPS)
    y = s[None, :, None, None] * (y - params["bn_mean"][None, :, None, None]) \
        + params["bn_beta"][None, :, None, None]
    y = jnp.maximum(y, 0.0)
    if sample_type == "upsample":
        y = jnp.repeat(jnp.repeat(y, 2, axis=2), 2, axis=3)
    else:
        ypad = jnp.pad(y, ((0, 0), (0, 0), (0, 1), (0, 1)))   # keras SAME pad (k=3, s=2)
        y = jax.lax.reduce_window(ypad, -jnp.inf, jax.lax.max,
                                  (1, 1, 3, 3), (1, 1, 2, 2), "VALID")
    return w[0] * x0 + w[1] * y


if __name__ == "__main__":
    key = jax.random.PRNGKey(0)
    ks = jax.random.split(key, 10)
    N, Cin, Cout = 2, 4, 8

    params = {
        "conv_w": 0.3 * jax.random.normal(ks[0], (Cout, Cin), jnp.float32),   # Conv2d 1x1 weight
        "conv_b": 0.1 * jax.random.normal(ks[1], (Cout,), jnp.float32),       # Conv2d bias
        "bn_gamma": 1.0 + 0.1 * jax.random.normal(ks[2], (Cout,), jnp.float32),
        "bn_beta": 0.1 * jax.random.normal(ks[3], (Cout,), jnp.float32),
        "bn_mean": 0.1 * jax.random.normal(ks[4], (Cout,), jnp.float32),
        "bn_var": 1.0 + 0.1 * jnp.abs(jax.random.normal(ks[5], (Cout,), jnp.float32)),
        "fuse_w": jnp.ones((2,), jnp.float32),                                # torch.ones(2)
    }

    # upsample: x[0] = (N, Cout, 32, 32), x[1] = (N, Cin, 16, 16)
    x0_up = jax.random.normal(ks[6], (N, Cout, 32, 32), jnp.float32)
    x1_up = jax.random.normal(ks[7], (N, Cin, 16, 16), jnp.float32)
    out_up = jax.block_until_ready(fusion_forward(x0_up, x1_up, params, "upsample"))
    ref_up = fusion_reference(x0_up, x1_up, params, "upsample")
    np.testing.assert_allclose(np.asarray(out_up), np.asarray(ref_up), rtol=2e-2, atol=2e-2)

    # downsample: x[0] = (N, Cout, 16, 16), x[1] = (N, Cin, 32, 32)
    x0_dn = jax.random.normal(ks[8], (N, Cout, 16, 16), jnp.float32)
    x1_dn = jax.random.normal(ks[9], (N, Cin, 32, 32), jnp.float32)
    out_dn = jax.block_until_ready(fusion_forward(x0_dn, x1_dn, params, "downsample"))
    ref_dn = fusion_reference(x0_dn, x1_dn, params, "downsample")
    np.testing.assert_allclose(np.asarray(out_dn), np.asarray(ref_dn), rtol=2e-2, atol=2e-2)

    print("KERNEL_OK")
</pallas_src>

<mosaic_0001>
module attributes {stable_mosaic.version = 11 : i64} {
  func.func @_up_kernel(%arg0: i32, %arg1: i32, %arg2: memref<1x4x256xf32, #tpu.memory_space<vmem>>, %arg3: memref<1x8x1024xf32, #tpu.memory_space<vmem>>, %arg4: memref<256x1024xbf16, #tpu.memory_space<vmem>>, %arg5: memref<8x4xf32, #tpu.memory_space<vmem>>, %arg6: memref<8x1xf32, #tpu.memory_space<vmem>>, %arg7: memref<2xf32, #tpu.memory_space<smem>>, %arg8: memref<1x8x1024xf32, #tpu.memory_space<vmem>>) attributes {dimension_semantics = [#tpu.dimension_semantics<parallel>, #tpu.dimension_semantics<parallel>], iteration_bounds = array<i64: 2, 1>, scalar_prefetch = 0 : i64, scratch_operands = 0 : i64, tpu.core_type = #tpu.core_type<tc>, window_params = [{transform_indices = @transform_0, window_bounds = array<i64: 1, 4, 256>}, {transform_indices = @transform_1, window_bounds = array<i64: 1, 8, 1024>}, {pipeline_mode = #tpu.pipeline_mode<synchronous>, transform_indices = @transform_2, window_bounds = array<i64: 256, 1024>}, {pipeline_mode = #tpu.pipeline_mode<synchronous>, transform_indices = @transform_3, window_bounds = array<i64: 8, 4>}, {pipeline_mode = #tpu.pipeline_mode<synchronous>, transform_indices = @transform_4, window_bounds = array<i64: 8, 1>}, {transform_indices = @transform_5, window_bounds = array<i64: 2>}, {transform_indices = @transform_6, window_bounds = array<i64: 1, 8, 1024>}]} {
    %c0 = arith.constant 0 : index
    %0 = memref.load %arg7[%c0] : memref<2xf32, #tpu.memory_space<smem>>
    %c1 = arith.constant 1 : index
    %1 = memref.load %arg7[%c1] : memref<2xf32, #tpu.memory_space<smem>>
    %c0_0 = arith.constant 0 : index
    %c0_1 = arith.constant 0 : index
    %c0_2 = arith.constant 0 : index
    %2 = vector.load %arg2[%c0_0, %c0_1, %c0_2] : memref<1x4x256xf32, #tpu.memory_space<vmem>>, vector<1x4x256xf32>
    %3 = vector.shape_cast %2 : vector<1x4x256xf32> to vector<4x256xf32>
    %c0_3 = arith.constant 0 : index
    %c0_4 = arith.constant 0 : index
    %4 = vector.load %arg5[%c0_3, %c0_4] : memref<8x4xf32, #tpu.memory_space<vmem>>, vector<8x4xf32>
    %cst = arith.constant dense<0.000000e+00> : vector<8x256xf32>
    %5 = tpu.matmul %4, %3, %cst {dimension_numbers = #tpu.dot_dimension_numbers<[1], [0], [0], [1], [0, 0, 1, 1], [], []>} : vector<8x4xf32>, vector<4x256xf32>, vector<8x256xf32> -> vector<8x256xf32>
    %c0_5 = arith.constant 0 : index
    %c0_6 = arith.constant 0 : index
    %6 = vector.load %arg6[%c0_5, %c0_6] : memref<8x1xf32, #tpu.memory_space<vmem>>, vector<8x1xf32>
    %7 = vector.broadcast %6 : vector<8x1xf32> to vector<8x256xf32>
    %8 = arith.addf %5, %7 : vector<8x256xf32>
    %cst_7 = arith.constant 0.000000e+00 : f32
    %9 = vector.broadcast %cst_7 : f32 to vector<8x256xf32>
    %10 = arith.maximumf %8, %9 : vector<8x256xf32>
    %11 = arith.truncf %10 : vector<8x256xf32> to vector<8x256xbf16>
    %c0_8 = arith.constant 0 : index
    %c0_9 = arith.constant 0 : index
    %12 = vector.load %arg4[%c0_8, %c0_9] : memref<256x1024xbf16, #tpu.memory_space<vmem>>, vector<256x1024xbf16>
    %cst_10 = arith.constant dense<0.000000e+00> : vector<8x1024xf32>
    %13 = tpu.matmul %11, %12, %cst_10 {dimension_numbers = #tpu.dot_dimension_numbers<[1], [0], [0], [1], [0, 0, 1, 1], [], []>} : vector<8x256xbf16>, vector<256x1024xbf16>, vector<8x1024xf32> -> vector<8x1024xf32>
    %c0_11 = arith.constant 0 : index
    %c0_12 = arith.constant 0 : index
    %c0_13 = arith.constant 0 : index
    %14 = vector.load %arg3[%c0_11, %c0_12, %c0_13] : memref<1x8x1024xf32, #tpu.memory_space<vmem>>, vector<1x8x1024xf32>
    %15 = vector.shape_cast %14 : vector<1x8x1024xf32> to vector<8x1024xf32>
    %16 = vector.broadcast %0 : f32 to vector<8x1024xf32>
    %17 = arith.mulf %16, %15 : vector<8x1024xf32>
    %18 = vector.broadcast %1 : f32 to vector<8x1024xf32>
    %19 = arith.mulf %18, %13 : vector<8x1024xf32>
    %20 = arith.addf %17, %19 : vector<8x1024xf32>
    %c0_14 = arith.constant 0 : index
    %c0_15 = arith.constant 0 : index
    %c0_16 = arith.constant 0 : index
    %21 = vector.load %arg8[%c0_14, %c0_15, %c0_16] : memref<1x8x1024xf32, #tpu.memory_space<vmem>>, vector<1x8x1024xf32>
    %22 = vector.shape_cast %21 : vector<1x8x1024xf32> to vector<8x1024xf32>
    %23 = vector.shape_cast %20 : vector<8x1024xf32> to vector<1x8x1024xf32>
    tpu.vector_store %arg8[%c0_14, %c0_15, %c0_16], %23 {strides = array<i32>} : memref<1x8x1024xf32, #tpu.memory_space<vmem>>, vector<1x8x1024xf32>,
    return
  }
  func.func @transform_0(%arg0: i32, %arg1: i32) -> (i32, i32, i32) {
    %c0_i32 = arith.constant 0 : i32
    %c0_i32_0 = arith.constant 0 : i32
    return %arg0, %c0_i32, %arg1 : i32, i32, i32
  }
  func.func @transform_1(%arg0: i32, %arg1: i32) -> (i32, i32, i32) {
    %c0_i32 = arith.constant 0 : i32
    %c0_i32_0 = arith.constant 0 : i32
    return %arg0, %c0_i32, %arg1 : i32, i32, i32
  }
  func.func @transform_2(%arg0: i32, %arg1: i32) -> (i32, i32) {
    %c0_i32 = arith.constant 0 : i32
    %c0_i32_0 = arith.constant 0 : i32
    %c0_i32_1 = arith.constant 0 : i32
    return %c0_i32, %c0_i32_0 : i32, i32
  }
  func.func @transform_3(%arg0: i32, %arg1: i32) -> (i32, i32) {
    %c0_i32 = arith.constant 0 : i32
    %c0_i32_0 = arith.constant 0 : i32
    %c0_i32_1 = arith.constant 0 : i32
    return %c0_i32, %c0_i32_0 : i32, i32
  }
  func.func @transform_4(%arg0: i32, %arg1: i32) -> (i32, i32) {
    %c0_i32 = arith.constant 0 : i32
    %c0_i32_0 = arith.constant 0 : i32
    %c0_i32_1 = arith.constant 0 : i32
    return %c0_i32, %c0_i32_0 : i32, i32
  }
  func.func @transform_5(%arg0: i32, %arg1: i32) -> i32 {
    %c0_i32 = arith.constant 0 : i32
    %c0_i32_0 = arith.constant 0 : i32
    return %c0_i32 : i32
  }
  func.func @transform_6(%arg0: i32, %arg1: i32) -> (i32, i32, i32) {
    %c0_i32 = arith.constant 0 : i32
    %c0_i32_0 = arith.constant 0 : i32
    return %arg0, %c0_i32, %arg1 : i32, i32, i32
  }
}

</mosaic_0001>

<bundles_post_ra>
// kernel: tpu_custom_call.1
= control target key start
LH: loop header
LB: loop body
LE: loop exit
PB: predicated region body
PF: predicated region fallthrough
CT: control target
= control target key end

     0   :  { %11 = vsyncpa [#allocation3], 0  ;;  %s2296_s0 = inlined_call_operand.vmem [shape: f32[2,4,256], index: 0, kind: input, shape index: {}]   ;;  %s2297_s1 = inlined_call_operand.hbm [shape: f32[2,8,1024], index: 1, kind: input, shape index: {}]   ;;  %s2298_s2 = inlined_call_operand.hbm [shape: bf16[256,1024], index: 2, kind: input, shape index: {}]   ;;  %s2299_s3 = inlined_call_operand.vmem [shape: f32[8,4], index: 3, kind: input, shape index: {}]   ;;  %s2300_s4 = inlined_call_operand.vmem [shape: f32[8,1], index: 4, kind: input, shape index: {}]   ;;  %s2301_s5 = inlined_call_operand.vmem [shape: f32[2], index: 5, kind: input, shape index: {}]   ;;  %s2302_s6 = inlined_call_operand.hbm [shape: f32[2,8,1024], index: 6, kind: output, shape index: {}]  }
   0x1   :  { %13 = vsyncpa [#allocation3 + $0x1], 0 }
   0x2   :  { %14 = vsyncpa [#allocation7], 0 }
   0x3   :  { %15 = vsyncpa [#allocation5], 0 }
   0x4   :  { %16 = vsyncpa [#allocation4], 0 }
   0x5   :  { %18 = vsyncpa [#allocation4 + $0x1], 0  ;;  %s2017_s21 = smov 0   ;;  %s2019_s22 = smov 0  }
   0x6   :  { %s2021_s23 = smov 0   ;;  %s2023_s24 = smov 0  }
   0x7   :  { %s2025_s25 = smov 0   ;;  %s2027_s26 = smov 0  }
   0x8 LB: > { %s1564_s27 = sadd.s32 4294967295, %s1972_s26   ;;  %s1565_s28 = sadd.s32 4294967294, %s1972_s26   ;;  %s1972_s26 = sphi %s2027_s26, %s24_s26   ;;  %s1968_s25 = sphi %s2025_s25, %s2325_s25   ;;  %s1964_s24 = sphi %s2023_s24, %s2324_s24   ;;  %s1960_s23 = sphi %s2021_s23, %s2323_s23   ;;  %s1956_s22 = sphi %s2019_s22, %s2322_s22   ;;  %s1952_s21 = sphi %s2017_s21, %s2321_s21  }
   0x9   : > { %p86_p0 = scmp.ne.s32.totalorder %s1956_s22, %s1952_s21  ;;  %p2051_p1 = scmp.eq.s32.totalorder %s1564_s27, 0 }
   0xa   : > { %p2055_p2 = scmp.eq.s32.totalorder %s1564_s27, 1  ;;  %p202_p3 = scmp.eq.s32.totalorder %s1565_s28, 1 }
   0xb   : > { %s2307_s29 = scalar_select %p2051_p1, 1, 0 }
   0xc   : > { %s2308_s30 = scalar_select %p2055_p2, 1, 0 }
   0xd   : > { %p2061_p4 = por %p2051_p1, %p86_p0  ;;  %p1566_p5 = scmp.ge.s32.totalorder %s1972_s26, 1 }
   0xe   : > { %p2066_p6 = por %p202_p3, %p86_p0  ;;  %p209_p7 = scmp.lt.s32.totalorder %s1972_s26, 3 }
   0xf   : > { %s2309_s7 = scalar_select %p2061_p4, 1, 0 }
  0x10   : > { %s2310_s8 = scalar_select %p2066_p6, 1, 0 }
  0x11   : > { %p2071_p8 = pnand %p1566_p5, %p209_p7  ;;  %s1974_s10 = smov [#allocation6]  }
  0x12   : > { %s221_s11 = sshll.u32 %s1974_s10, 4  ;;  %s241_s14 = sshll.u32 %s2301_s5, 4  ;;  %s222_s11 = int_to_ptr.vmem [resolvable:$true] %s221_s11  ;;  %s2087_s14 = int_to_ptr.vmem [resolvable:$true] %s241_s14 }
  0x13   : > { %s2311_s9 = scalar_select %p2071_p8, 1, 0 }
  0x14   : > { %p1732_p9 = pneg %p2071_p8  ;;  %s1809_s18 = scalar_lea.hbm %s2298_s2, 16384 }
  0x15   : > { %p1810_p12 = scmp.ne.s32.totalorder %s2298_s2, %s1809_s18  ;;  %p1816_p5 = scmp.lt.u32.totalorder %s1809_s18, %s2298_s2 }
  0x16   : > { %p2083_p11 = pnand %p1732_p9, %p2051_p1 }
  0x18   : > { %p1811_p13 = pneg %p2083_p11 }
  0x1a   : > { %p1812_p0 = pnand %p1811_p13, %p1810_p12 }
  0x1c   : > { %p1813_p3 = pneg %p1812_p0 }
  0x1e   : > { %p1818_p7 = pnand %p1816_p5, %p1813_p3 }
  0x20   : > { %1821 = shalt.err (!%p1818_p7)
}
  0x21   : > { %s1822_s10 = scalar_lea.vmem %s222_s11, 16384  ;;  %p1830_p1 = scmp.lt.s32.totalorder %s222_s11, %s222_s11 }
  0x22   : > { %p1823_p9 = scmp.ne.s32.totalorder %s222_s11, %s1822_s10  ;;  %p1831_p4 = scmp.lt.s32.totalorder %s1822_s10, %s1822_s10 }
  0x24   : > { %p1825_p10 = pnand %p1823_p9, %p1811_p13  ;;  %p1832_p8 = por %p1831_p4, %p1830_p1 }
  0x26   : > { %p1826_p6 = pneg %p1825_p10 }
  0x28   : > { %p1833_p2 = pnand %p1832_p8, %p1826_p6 }
  0x2a   : > { %1836 = shalt.err (!%p1833_p2)
}
  0x2b   : > { %s1975_s12 = smov 512   ;;  %s1976_s13 = smov 32  }
  0x2c   : > { %1735 = dma.hbm_to_vmem [thread:$0]  (!%p2083_p11), %s2298_s2, 16384, %s222_s11, [#allocation7], %s1975_s12, %s1975_s12, %s1976_s13  }
  0x2d   : > { %s1837_s18 = scalar_lea.vmem %s2087_s14, 16  ;;  %p1845_p2 = scmp.lt.s32.totalorder %s2087_s14, %s2087_s14 }
  0x2e   : > { %p1838_p12 = scmp.ne.s32.totalorder %s2087_s14, %s1837_s18  ;;  %p1846_p4 = scmp.lt.s32.totalorder %s1837_s18, %s1837_s18 }
  0x30   : > { %p1840_p10 = pnand %p1838_p12, %p1811_p13  ;;  %p1847_p6 = por %p1846_p4, %p1845_p2 }
  0x32   : > { %p1841_p1 = pneg %p1840_p10 }
  0x34   : > { %p1848_p8 = pnand %p1847_p6, %p1841_p1 }
  0x36   : > { %1851 = shalt.err (!%p1848_p8)
}
  0x37   : > { %s1977_s19 = smov [#allocation8]   ;;  %s36_s11 = sadd.s32 1, %s1968_s25 }
  0x38   : > { %1738 = dma.vmem_to_smem (!%p2083_p11), %s2087_s14, 16, %s1977_s19, [#allocation5]  }
  0x39   : > { %s73_s20 = sadd.s32 1, %s1960_s23  ;;  %p38_p13 = scmp.ge.s32.totalorder %s36_s11, 2 }
  0x3a   : > { %p80_p0 = scmp.ne.s32.totalorder %s1960_s23, %s1956_s22  ;;  %p81_p3 = scmp.eq.s32.totalorder %s1972_s26, 0 }
  0x3b   : > { %p1749_p5 = scmp.lt.s32.totalorder %s1972_s26, 2  ;;  %s2327_s11 = smov (%p38_p13, %s36_s11), 0 }
  0x3c   : > { %p82_p7 = por %p81_p3, %p80_p0  ;;  %p2313_p9 = scmp.ne.s32.totalorder %s2308_s30, 0 }
  0x3d   : > { %s68_s27 = ssub.s32 %s1968_s25, %s2327_s11  ;;  %s265_s28 = sand.u32 1, %s1960_s23  }
  0x3e   : > { %p2131_p12 = por %p2313_p9, %p80_p0  ;;  %p71_p10 = scmp.eq.s32.totalorder %s68_s27, 0 }
  0x3f   : > { %s1570_s14 = sshll.u32 %s265_s28, 6  ;;  %s1717_s10 = sshll.u32 %s1968_s25, 10 }
  0x40   : > { %s2140_s12 = scalar_select %p71_p10, %s1960_s23, %s73_s20  }
  0x41   : > { %s2145_s17 = scalar_lea.hbm %s2297_s1, %s1717_s10  ;;  %s269_s30 = scalar_lea.vmem [#allocation2], %s1570_s14 }
  0x42   : > { %s279_s18 = sshll.u32 %s269_s30, 4  ;;  %p2149_p11 = pnand %p1749_p5, %p82_p7  ;;  %s2153_s18 = int_to_ptr.vmem [resolvable:$true] %s279_s18 }
  0x43   : > { %s266_s20 = scalar_lea.sflag [#allocation3], %s265_s28  ;;  %s1852_s27 = scalar_lea.hbm %s2145_s17, 1024 }
  0x44   : > { %p1853_p1 = scmp.ne.s32.totalorder %s2145_s17, %s1852_s27  ;;  %p1854_p2 = pneg %p2149_p11 }
  0x45   : > { %s1857_s13 = scalar_lea.hbm %s2297_s1, 2048  ;;  %p1858_p8 = scmp.lt.u32.totalorder %s2145_s17, %s2297_s1 }
  0x46   : > { %p1855_p4 = pnand %p1854_p2, %p1853_p1  ;;  %p1859_p13 = scmp.lt.u32.totalorder %s1857_s13, %s1852_s27 }
  0x47   : > { %p1861_p3 = scmp.lt.u32.totalorder %s1852_s27, %s2145_s17 }
  0x48   : > { %p1856_p6 = pneg %p1855_p4  ;;  %p1860_p0 = por %p1859_p13, %p1858_p8 }
  0x4a   : > { %p1862_p5 = por %p1861_p3, %p1860_p0 }
  0x4c   : > { %p1863_p7 = pnand %p1862_p5, %p1856_p6 }
  0x4e   : > { %1866 = shalt.err (!%p1863_p7)
}
  0x4f   : > { %s1867_s28 = scalar_lea.vmem %s2153_s18, 1024  ;;  %s1978_s14 = smov [#allocation2]  }
  0x50   : > { %p1868_p9 = scmp.ne.s32.totalorder %s2153_s18, %s1867_s28  ;;  %s1872_s10 = sshll.u32 %s1978_s14, 4  ;;  %s1873_s10 = int_to_ptr.vmem [resolvable:$false] %s1872_s10 }
  0x51   : > { %s1874_s16 = scalar_lea.vmem %s1873_s10, 2048  ;;  %p1875_p4 = scmp.lt.s32.totalorder %s2153_s18, %s1873_s10 }
  0x52   : > { %p1870_p10 = pnand %p1868_p9, %p1854_p2  ;;  %p1876_p8 = scmp.lt.s32.totalorder %s1874_s16, %s1867_s28 }
  0x54   : > { %p1871_p1 = pneg %p1870_p10  ;;  %p1877_p13 = por %p1876_p8, %p1875_p4 }
  0x56   : > { %p1878_p0 = pnand %p1877_p13, %p1871_p1 }
  0x58   : > { %1881 = shalt.err (!%p1878_p0)
}
  0x59   : > { %1742 = dma.hbm_to_vmem [thread:$0]  (!%p2149_p11), %s2145_s17, 1024, %s2153_s18, %s266_s20  }
  0x5a   : > { %p2316_p6 = scmp.ne.s32.totalorder %s2311_s9, 0 }
  0x5b   : > { %s2183_s27 = sand.u32 (!%p2316_p6), 1, %s1956_s22   ;;  %p2317_p2 = scmp.ne.s32.totalorder (!%p2316_p6), %s2309_s7, 0 }
  0x5c   : > { %288 = sbr.rel (%p2316_p6) target bundleno = 634 (0x27a), region = 44  ;;  %s1574_s13 = sshll.u32 (!%p2316_p6), %s2183_s27, 6 }
  0x5d   : > { %s291_s30 = scalar_lea.sflag (!%p2316_p6), [#allocation3], %s2183_s27  ;;  %s2189_s28 = scalar_lea.vmem (!%p2316_p6), [#allocation2], %s1574_s13 }
  0x63   : > { %1935 = dma.done.wait (%p2317_p2), %s291_s30, 1024  }
  0x64   : > { %1937 = vsyncadd (%p2317_p2), %s291_s30, 4294966272  ;;  %p2318_p11 = scmp.ne.s32.totalorder %s2307_s29, 0 }
  0x66   : > { %1939 = dma.done.wait (%p2318_p11), [#allocation7], 16384  }
  0x67   : > { %1941 = vsyncadd (%p2318_p11), [#allocation7], 4294950912 }
  0x68   : > { %1943 = dma.done.wait (%p2318_p11), [#allocation5], 16  }
  0x69   : > { %1945 = vsyncadd (%p2318_p11), [#allocation5], 4294967280 }
  0x6a   : > { %307 = sfence }
  0x6b   : > { %p342_p3 = scmp.lt.s32.totalorder %s1964_s24, 1  ;;  %v1979_v0 = vmov 0.0   ;;  %v1980_v1 = vmov 0   ;;  %v357_v2 = vld [vmem:[%s2300_s4] sm:$0xff]  ;;  %v450_v8 = vld [vmem:[#allocation6 + $0x8] sm:$0xff]  ;;  %vm369_vm0 = vcmask 1043456  }
  0x6c   : > { %438 = vmatprep.mubr.f32.mxu0 %v1979_v0  ;;  %1807 = vset.pattern.permute.xlu0 %v1980_v1  ;;  %v449_v3 = vld [vmem:[#allocation6] sm:$0xff]  ;;  %v454_v10 = vld [vmem:[#allocation6 + $0x28] sm:$0xff]  ;;  %vm365_vm1 = vcmask 31744   ;;  %s353_s16 = sld [smem:[#allocation8]]  ;;  %s1580_s30 = sld [smem:[#allocation8 + $0x1]] }
  0x6d   : > { %v453_v4 = vld [vmem:[#allocation6 + $0x20] sm:$0xff]  ;;  %s343_s17 = scalar_select %p342_p3, %s1964_s24, 1  ;;  %360 = vperm.xlu0 %1807, %v357_v2   ;;  %v458_v16 = vld [vmem:[#allocation6 + $0x48] sm:$0xff]  ;;  %v1587_v20 = vcombine.high %v450_v8, %v454_v10  ;;  %v1586_v24 = vcombine.low %v450_v8, %v454_v10 }
  0x6e   : > { %v1585_v5 = vcombine.high %v449_v3, %v453_v4  ;;  %v1584_v6 = vcombine.low %v449_v3, %v453_v4  ;;  %v457_v7 = vld [vmem:[#allocation6 + $0x40] sm:$0xff]  ;;  %v462_v17 = vld [vmem:[#allocation6 + $0x68] sm:$0xff]  ;;  %s2228_s7 = scalar_lea.vmem [#allocation9], %s1574_s13  ;;  %s1719_s13 = sshll.u32 %s1964_s24, 10 }
  0x6f   : > { %v461_v9 = vld [vmem:[#allocation6 + $0x60] sm:$0xff]  ;;  %s1718_s29 = sshll.u32 %s343_s17, 3  ;;  %v1595_v25 = vcombine.high %v458_v16, %v462_v17  ;;  %v466_v27 = vld [vmem:[#allocation6 + $0x88] sm:$0xff]  ;;  %v1594_v32 = vcombine.low %v458_v16, %v462_v17  ;;  %s1440_s9 = sshll.u32 %s2228_s7, 4  ;;  %s2245_s9 = int_to_ptr.vmem [resolvable:$true] %s1440_s9 }
  0x70   : > { %1217 = vmatprep.subr.bf16.mxu1 %v1585_v5  ;;  %v1593_v11 = vcombine.high %v457_v7, %v461_v9  ;;  %v465_v12 = vld [vmem:[#allocation6 + $0x80] sm:$0xff]  ;;  %s349_s20 = scalar_lea.vmem %s2296_s0, %s1718_s29  ;;  %v1592_v14 = vcombine.low %v457_v7, %v461_v9  ;;  %v470_v28 = vld [vmem:[#allocation6 + $0xa8] sm:$0xff]  ;;  %s2243_s29 = scalar_lea.hbm %s2302_s6, %s1719_s13 }
  0x71   : > { %v469_v13 = vld [vmem:[#allocation6 + $0xa0] sm:$0xff]  ;;  %1218 = vmatpush1.bf16.msra.mxu1 %v1584_v6  ;;  %v1603_v33 = vcombine.high %v466_v27, %v470_v28  ;;  %v474_v35 = vld [vmem:[#allocation6 + $0xc8] sm:$0xff]  ;;  %v1602_v40 = vcombine.low %v466_v27, %v470_v28  ;;  %s1424_s24 = scalar_lea.sflag [#allocation4], %s2183_s27  ;;  %s1882_s18 = scalar_lea.vmem %s2245_s9, 1024 }
  0x72   : > { %v355_v15 = vld [vmem:[%s349_s20] sm:$0xff]  ;;  %1219 = vmatprep.subr.bf16.mxu1 %v1593_v11  ;;  %v1601_v18 = vcombine.high %v465_v12, %v469_v13  ;;  %v1600_v26 = vcombine.low %v465_v12, %v469_v13  ;;  %v478_v36 = vld [vmem:[#allocation6 + $0xe8] sm:$0xff]  ;;  %p1883_p5 = scmp.ne.s32.totalorder %s2245_s9, %s1882_s18  ;;  %s1981_s19 = smov [#allocation9]  }
  0x73   : > { %v364_v19 = vcombine.high %v355_v15, %v355_v15  ;;  %v473_v21 = vld [vmem:[#allocation6 + $0xc0] sm:$0xff]  ;;  %v1611_v41 = vcombine.high %v474_v35, %v478_v36  ;;  %v482_v43 = vld [vmem:[#allocation6 + $0x108] sm:$0xff]  ;;  %v1610_v48 = vcombine.low %v474_v35, %v478_v36  ;;  %s1886_s20 = sshll.u32 %s1981_s19, 4  ;;  %s1887_s20 = int_to_ptr.vmem [resolvable:$false] %s1886_s20 }
  0x74   : > { %v477_v22 = vld [vmem:[#allocation6 + $0xe0] sm:$0xff]  ;;  %v486_v44 = vld [vmem:[#allocation6 + $0x128] sm:$0xff]  ;;  %p1884_p7 = pnand %p1883_p5, %p2131_p12  ;;  %s1888_s14 = scalar_lea.vmem %s1887_s20, 2048 }
  0x75   : > { %v356_v23 = vld [vmem:[%s2299_s3] sm:$0xff]  ;;  %1581 = vmatprep.subr.msk.mxu0 %vm369_vm0, %v364_v19  ;;  %1220 = vmatpush1.bf16.msra.mxu1 %v1592_v14  ;;  %v1609_v29 = vcombine.high %v473_v21, %v477_v22  ;;  %v1608_v34 = vcombine.low %v473_v21, %v477_v22  ;;  %v1619_v49 = vcombine.high %v482_v43, %v486_v44  ;;  %v490_v51 = vld [vmem:[#allocation6 + $0x148] sm:$0xff]  ;;  %p1889_p10 = scmp.lt.s32.totalorder %s2245_s9, %s1887_s20  ;;  %p1890_p1 = scmp.lt.s32.totalorder %s1888_s14, %s1882_s18 }
  0x76   : > { %1582 = vmatpush1.msk.msra.mxu0 %vm369_vm0, %v355_v15  ;;  %1221 = vmatprep.subr.bf16.mxu1 %v1601_v18  ;;  %v481_v30 = vld [vmem:[#allocation6 + $0x100] sm:$0xff]  ;;  %v494_v52 = vld [vmem:[#allocation6 + $0x168] sm:$0xff]  ;;  %v1618_v56 = vcombine.low %v482_v43, %v486_v44  ;;  %p1885_p9 = pneg %p1884_p7 }
  0x77   : > { %1583 = vmatmul.mubr.msk.f32.vlgmr.msra.gmra.mrb[0].mxu0 %vm365_vm1, %v356_v23  ;;  %1258 = vmatprep.subr.bf16.mxu0 %v1587_v20  ;;  %v485_v31 = vld [vmem:[#allocation6 + $0x120] sm:$0xff]  ;;  %v1627_v57 = vcombine.high %v490_v51, %v494_v52  ;;  %v498_v59 = vld [vmem:[#allocation6 + $0x188] sm:$0xff]  ;;  %v1626_v0 = vcombine.low %v490_v51, %v494_v52  ;;  %p1891_p4 = por %p1890_p1, %p1889_p10 }
  0x78   : > { %1259 = vmatpush1.bf16.msra.mxu0 %v1586_v24  ;;  %v1617_v37 = vcombine.high %v481_v30, %v485_v31  ;;  %v489_v38 = vld [vmem:[#allocation6 + $0x140] sm:$0xff]  ;;  %v1616_v42 = vcombine.low %v481_v30, %v485_v31  ;;  %v502_v60 = vld [vmem:[#allocation6 + $0x1a8] sm:$0xff] }
  0x79   : > { %1260 = vmatprep.subr.bf16.mxu0 %v1595_v25  ;;  %1222 = vmatpush1.bf16.msra.mxu1 %v1600_v26  ;;  %v493_v39 = vld [vmem:[#allocation6 + $0x160] sm:$0xff]  ;;  %v1635_v1 = vcombine.high %v498_v59, %v502_v60  ;;  %v506_v3 = vld [vmem:[#allocation6 + $0x1c8] sm:$0xff]  ;;  %v1634_v8 = vcombine.low %v498_v59, %v502_v60  ;;  %p1892_p8 = pnand %p1891_p4, %p1885_p9 }
  0x7a   : > { %1223 = vmatprep.subr.bf16.mxu1 %v1609_v29  ;;  %v1625_v45 = vcombine.high %v489_v38, %v493_v39  ;;  %v497_v46 = vld [vmem:[#allocation6 + $0x180] sm:$0xff]  ;;  %v1624_v50 = vcombine.low %v489_v38, %v493_v39  ;;  %v510_v4 = vld [vmem:[#allocation6 + $0x1e8] sm:$0xff] }
  0x7b   : > { %v501_v47 = vld [vmem:[#allocation6 + $0x1a0] sm:$0xff]  ;;  %v1643_v9 = vcombine.high %v506_v3, %v510_v4  ;;  %v514_v11 = vld [vmem:[#allocation6 + $0x208] sm:$0xff]  ;;  %v1642_v16 = vcombine.low %v506_v3, %v510_v4 }
  0x7c   : > { %1261 = vmatpush1.bf16.msra.mxu0 %v1594_v32  ;;  %v1633_v53 = vcombine.high %v497_v46, %v501_v47  ;;  %v505_v54 = vld [vmem:[#allocation6 + $0x1c0] sm:$0xff]  ;;  %v1632_v58 = vcombine.low %v497_v46, %v501_v47  ;;  %v518_v12 = vld [vmem:[#allocation6 + $0x228] sm:$0xff] }
  0x7d   : > { %1262 = vmatprep.subr.bf16.mxu0 %v1603_v33  ;;  %1224 = vmatpush1.bf16.msra.mxu1 %v1608_v34  ;;  %v509_v55 = vld [vmem:[#allocation6 + $0x1e0] sm:$0xff]  ;;  %v1651_v17 = vcombine.high %v514_v11, %v518_v12  ;;  %v522_v19 = vld [vmem:[#allocation6 + $0x248] sm:$0xff]  ;;  %v1650_v24 = vcombine.low %v514_v11, %v518_v12 }
  0x7e   : > { %1225 = vmatprep.subr.bf16.mxu1 %v1617_v37  ;;  %v1641_v61 = vcombine.high %v505_v54, %v509_v55  ;;  %v513_v62 = vld [vmem:[#allocation6 + $0x200] sm:$0xff]  ;;  %v1640_v2 = vcombine.low %v505_v54, %v509_v55  ;;  %v526_v20 = vld [vmem:[#allocation6 + $0x268] sm:$0xff] }
  0x7f   : > { %v517_v63 = vld [vmem:[#allocation6 + $0x220] sm:$0xff]  ;;  %v1659_v25 = vcombine.high %v522_v19, %v526_v20  ;;  %v530_v27 = vld [vmem:[#allocation6 + $0x288] sm:$0xff]  ;;  %v1658_v32 = vcombine.low %v522_v19, %v526_v20 }
  0x80   : > { %1263 = vmatpush1.bf16.msra.mxu0 %v1602_v40  ;;  %v1649_v5 = vcombine.high %v513_v62, %v517_v63  ;;  %v521_v6 = vld [vmem:[#allocation6 + $0x240] sm:$0xff]  ;;  %v1648_v10 = vcombine.low %v513_v62, %v517_v63  ;;  %v534_v28 = vld [vmem:[#allocation6 + $0x2a8] sm:$0xff] }
  0x81   : > { %1264 = vmatprep.subr.bf16.mxu0 %v1611_v41  ;;  %1226 = vmatpush1.bf16.msra.mxu1 %v1616_v42  ;;  %v525_v7 = vld [vmem:[#allocation6 + $0x260] sm:$0xff]  ;;  %v1667_v33 = vcombine.high %v530_v27, %v534_v28  ;;  %v538_v35 = vld [vmem:[#allocation6 + $0x2c8] sm:$0xff]  ;;  %v1666_v40 = vcombine.low %v530_v27, %v534_v28  ;;  %v467_v27 = vld [vmem:[#allocation6 + $0x90] sm:$0xff] }
  0x82   : > { %1227 = vmatprep.subr.bf16.mxu1 %v1625_v45  ;;  %v1657_v13 = vcombine.high %v521_v6, %v525_v7  ;;  %v529_v14 = vld [vmem:[#allocation6 + $0x280] sm:$0xff]  ;;  %v1656_v18 = vcombine.low %v521_v6, %v525_v7  ;;  %v542_v36 = vld [vmem:[#allocation6 + $0x2e8] sm:$0xff]  ;;  %v451_v6 = vld [vmem:[#allocation6 + $0x10] sm:$0xff] }
  0x83   : > { %v533_v15 = vld [vmem:[#allocation6 + $0x2a0] sm:$0xff]  ;;  %v1675_v41 = vcombine.high %v538_v35, %v542_v36  ;;  %v546_v43 = vld [vmem:[#allocation6 + $0x308] sm:$0xff]  ;;  %v455_v7 = vld [vmem:[#allocation6 + $0x30] sm:$0xff] }
  0x84   : > { %1265 = vmatpush1.bf16.msra.mxu0 %v1610_v48  ;;  %v1665_v21 = vcombine.high %v529_v14, %v533_v15  ;;  %v537_v22 = vld [vmem:[#allocation6 + $0x2c0] sm:$0xff]  ;;  %v1664_v26 = vcombine.low %v529_v14, %v533_v15  ;;  %v550_v44 = vld [vmem:[#allocation6 + $0x328] sm:$0xff]  ;;  %v1674_v48 = vcombine.low %v538_v35, %v542_v36  ;;  %v1588_v11 = vcombine.low %v451_v6, %v455_v7 }
  0x85   : > { %1266 = vmatprep.subr.bf16.mxu0 %v1619_v49  ;;  %1228 = vmatpush1.bf16.msra.mxu1 %v1624_v50  ;;  %v541_v23 = vld [vmem:[#allocation6 + $0x2e0] sm:$0xff]  ;;  %v1683_v49 = vcombine.high %v546_v43, %v550_v44  ;;  %v554_v51 = vld [vmem:[#allocation6 + $0x348] sm:$0xff]  ;;  %v1682_v54 = vcombine.low %v546_v43, %v550_v44 }
  0x86   : > { %1229 = vmatprep.subr.bf16.mxu1 %v1633_v53  ;;  %v1673_v29 = vcombine.high %v537_v22, %v541_v23  ;;  %v545_v30 = vld [vmem:[#allocation6 + $0x300] sm:$0xff]  ;;  %v1672_v34 = vcombine.low %v537_v22, %v541_v23  ;;  %v558_v52 = vld [vmem:[#allocation6 + $0x368] sm:$0xff]  ;;  %v463_v22 = vld [vmem:[#allocation6 + $0x70] sm:$0xff] }
  0x87   : > { %v549_v31 = vld [vmem:[#allocation6 + $0x320] sm:$0xff]  ;;  %v1691_v55 = vcombine.high %v554_v51, %v558_v52  ;;  %v460_v23 = vld [vmem:[#allocation6 + $0x58] sm:$0xff] }
  0x88   : > { %1267 = vmatpush1.bf16.msra.mxu0 %v1618_v56  ;;  %v1681_v37 = vcombine.high %v545_v30, %v549_v31  ;;  %v553_v38 = vld [vmem:[#allocation6 + $0x340] sm:$0xff]  ;;  %v1680_v42 = vcombine.low %v545_v30, %v549_v31  ;;  %v1690_v56 = vcombine.low %v554_v51, %v558_v52  ;;  %v471_v30 = vld [vmem:[#allocation6 + $0xb0] sm:$0xff]  ;;  %v468_v31 = vld [vmem:[#allocation6 + $0x98] sm:$0xff] }
  0x89   : > { %1268 = vmatprep.subr.bf16.mxu0 %v1627_v57  ;;  %1230 = vmatpush1.bf16.msra.mxu1 %v1632_v58  ;;  %v557_v39 = vld [vmem:[#allocation6 + $0x360] sm:$0xff]  ;;  %v562_v57 = vld [vmem:[#allocation6 + $0x388] sm:$0xff]  ;;  %v1605_v35 = vcombine.high %v467_v27, %v471_v30 }
  0x8a   : > { %1231 = vmatprep.subr.bf16.mxu1 %v1641_v61  ;;  %v1689_v45 = vcombine.high %v553_v38, %v557_v39  ;;  %v561_v46 = vld [vmem:[#allocation6 + $0x380] sm:$0xff]  ;;  %v1688_v50 = vcombine.low %v553_v38, %v557_v39  ;;  %v566_v58 = vld [vmem:[#allocation6 + $0x3a8] sm:$0xff]  ;;  %v479_v38 = vld [vmem:[#allocation6 + $0xf0] sm:$0xff] }
  0x8b   : > { %v565_v47 = vld [vmem:[#allocation6 + $0x3a0] sm:$0xff]  ;;  %v1699_v59 = vcombine.high %v562_v57, %v566_v58  ;;  %v1698_v60 = vcombine.low %v562_v57, %v566_v58  ;;  %v476_v39 = vld [vmem:[#allocation6 + $0xd8] sm:$0xff] }
  0x8c   : > { %1269 = vmatpush1.bf16.msra.mxu0 %v1626_v0  ;;  %v1697_v53 = vcombine.high %v561_v46, %v565_v47  ;;  %v1696_v61 = vcombine.low %v561_v46, %v565_v47  ;;  %v569_v62 = vld [vmem:[#allocation6 + $0x3c0] sm:$0xff]  ;;  %v570_v0 = vld [vmem:[#allocation6 + $0x3c8] sm:$0xff]  ;;  %v487_v46 = vld [vmem:[#allocation6 + $0x130] sm:$0xff] }
  0x8d   : > { %1270 = vmatprep.subr.bf16.mxu0 %v1635_v1  ;;  %1232 = vmatpush1.bf16.msra.mxu1 %v1640_v2  ;;  %v573_v63 = vld [vmem:[#allocation6 + $0x3e0] sm:$0xff]  ;;  %v574_v2 = vld [vmem:[#allocation6 + $0x3e8] sm:$0xff]  ;;  %v484_v47 = vld [vmem:[#allocation6 + $0x118] sm:$0xff] }
  0x8e   : > { %1233 = vmatprep.subr.bf16.mxu1 %v1649_v5  ;;  %v1705_v1 = vcombine.high %v569_v62, %v573_v63  ;;  %v1706_v3 = vcombine.low %v570_v0, %v574_v2  ;;  %v1707_v4 = vcombine.high %v570_v0, %v574_v2  ;;  %v1704_v5 = vcombine.low %v569_v62, %v573_v63  ;;  %v503_v62 = vld [vmem:[#allocation6 + $0x1b0] sm:$0xff]  ;;  %v500_v63 = vld [vmem:[#allocation6 + $0x198] sm:$0xff] }
  0x8f   : > { %v504_v0 = vld [vmem:[#allocation6 + $0x1b8] sm:$0xff] }
  0x90   : > { %1271 = vmatpush1.bf16.msra.mxu0 %v1634_v8  ;;  %v452_v8 = vld [vmem:[#allocation6 + $0x18] sm:$0xff] }
  0x91   : > { %1272 = vmatprep.subr.bf16.mxu0 %v1643_v9  ;;  %1234 = vmatpush1.bf16.msra.mxu1 %v1648_v10  ;;  %v1589_v9 = vcombine.high %v451_v6, %v455_v7  ;;  %v456_v10 = vld [vmem:[#allocation6 + $0x38] sm:$0xff]  ;;  %v511_v6 = vld [vmem:[#allocation6 + $0x1f0] sm:$0xff] }
  0x92   : > { %1235 = vmatprep.subr.bf16.mxu1 %v1657_v13  ;;  %v1590_v12 = vcombine.low %v452_v8, %v456_v10  ;;  %v1591_v13 = vcombine.high %v452_v8, %v456_v10  ;;  %v508_v7 = vld [vmem:[#allocation6 + $0x1d8] sm:$0xff]  ;;  %v1638_v10 = vcombine.low %v500_v63, %v504_v0 }
  0x93   : > { %v512_v8 = vld [vmem:[#allocation6 + $0x1f8] sm:$0xff] }
  0x94   : > { %1273 = vmatpush1.bf16.msra.mxu0 %v1642_v16 }
  0x95   : > { %1274 = vmatprep.subr.bf16.mxu0 %v1651_v17  ;;  %1236 = vmatpush1.bf16.msra.mxu1 %v1656_v18 }
  0x96   : > { %1237 = vmatprep.subr.bf16.mxu1 %v1665_v21  ;;  %v459_v21 = vld [vmem:[#allocation6 + $0x50] sm:$0xff] }
  0x97   : > { %v1597_v28 = vcombine.high %v459_v21, %v463_v22 }
  0x98   : > { %1275 = vmatpush1.bf16.msra.mxu0 %v1650_v24  ;;  %v464_v24 = vld [vmem:[#allocation6 + $0x78] sm:$0xff] }
  0x99   : > { %1276 = vmatprep.subr.bf16.mxu0 %v1659_v25  ;;  %1238 = vmatpush1.bf16.msra.mxu1 %v1664_v26 }
  0x9a   : > { %1239 = vmatprep.subr.bf16.mxu1 %v1673_v29  ;;  %v1599_v29 = vcombine.high %v460_v23, %v464_v24 }
  0x9c   : > { %1277 = vmatpush1.bf16.msra.mxu0 %v1658_v32  ;;  %v472_v32 = vld [vmem:[#allocation6 + $0xb8] sm:$0xff] }
  0x9d   : > { %1278 = vmatprep.subr.bf16.mxu0 %v1667_v33  ;;  %1240 = vmatpush1.bf16.msra.mxu1 %v1672_v34  ;;  %v1596_v33 = vcombine.low %v459_v21, %v463_v22  ;;  %v1598_v34 = vcombine.low %v460_v23, %v464_v24  ;;  %v1607_v36 = vcombine.high %v468_v31, %v472_v32  ;;  %v523_v21 = vld [vmem:[#allocation6 + $0x250] sm:$0xff]  ;;  %v524_v23 = vld [vmem:[#allocation6 + $0x258] sm:$0xff] }
  0x9e   : > { %1241 = vmatprep.subr.bf16.mxu1 %v1681_v37  ;;  %v475_v37 = vld [vmem:[#allocation6 + $0xd0] sm:$0xff]  ;;  %v528_v24 = vld [vmem:[#allocation6 + $0x278] sm:$0xff] }
  0x9f   : > { %v1613_v43 = vcombine.high %v475_v37, %v479_v38  ;;  %v527_v22 = vld [vmem:[#allocation6 + $0x270] sm:$0xff] }
  0xa0   : > { %1279 = vmatpush1.bf16.msra.mxu0 %v1666_v40  ;;  %v480_v40 = vld [vmem:[#allocation6 + $0xf8] sm:$0xff] }
  0xa1   : > { %1280 = vmatprep.subr.bf16.mxu0 %v1675_v41  ;;  %1242 = vmatpush1.bf16.msra.mxu1 %v1680_v42  ;;  %v1604_v41 = vcombine.low %v467_v27, %v471_v30  ;;  %v1606_v42 = vcombine.low %v468_v31, %v472_v32  ;;  %v1615_v44 = vcombine.high %v476_v39, %v480_v40  ;;  %v531_v30 = vld [vmem:[#allocation6 + $0x290] sm:$0xff]  ;;  %v532_v32 = vld [vmem:[#allocation6 + $0x298] sm:$0xff] }
  0xa2   : > { %1243 = vmatprep.subr.bf16.mxu1 %v1689_v45  ;;  %v483_v45 = vld [vmem:[#allocation6 + $0x110] sm:$0xff] }
  0xa3   : > { %v1621_v51 = vcombine.high %v483_v45, %v487_v46  ;;  %v1620_v57 = vcombine.low %v483_v45, %v487_v46  ;;  %v535_v31 = vld [vmem:[#allocation6 + $0x2b0] sm:$0xff] }
  0xa4   : > { %1281 = vmatpush1.bf16.msra.mxu0 %v1674_v48  ;;  %v488_v48 = vld [vmem:[#allocation6 + $0x138] sm:$0xff]  ;;  %v547_v46 = vld [vmem:[#allocation6 + $0x310] sm:$0xff] }
  0xa5   : > { %1282 = vmatprep.subr.bf16.mxu0 %v1683_v49  ;;  %1244 = vmatpush1.bf16.msra.mxu1 %v1688_v50  ;;  %v1612_v49 = vcombine.low %v475_v37, %v479_v38  ;;  %v1614_v50 = vcombine.low %v476_v39, %v480_v40  ;;  %v1623_v52 = vcombine.high %v484_v47, %v488_v48  ;;  %v539_v38 = vld [vmem:[#allocation6 + $0x2d0] sm:$0xff]  ;;  %v540_v40 = vld [vmem:[#allocation6 + $0x2d8] sm:$0xff] }
  0xa6   : > { %1245 = vmatprep.subr.bf16.mxu1 %v1697_v53  ;;  %v491_v53 = vld [vmem:[#allocation6 + $0x150] sm:$0xff]  ;;  %v1622_v58 = vcombine.low %v484_v47, %v488_v48  ;;  %v548_v48 = vld [vmem:[#allocation6 + $0x318] sm:$0xff] }
  0xa7   : > { %v543_v39 = vld [vmem:[#allocation6 + $0x2f0] sm:$0xff] }
  0xa8   : > { %1283 = vmatpush1.bf16.msra.mxu0 %v1682_v54  ;;  %v495_v54 = vld [vmem:[#allocation6 + $0x170] sm:$0xff] }
  0xa9   : > { %1284 = vmatprep.subr.bf16.mxu0 %v1691_v55  ;;  %1246 = vmatpush1.bf16.msra.mxu1 %v1696_v61  ;;  %v492_v55 = vld [vmem:[#allocation6 + $0x158] sm:$0xff]  ;;  %v499_v61 = vld [vmem:[#allocation6 + $0x190] sm:$0xff] }
  0xaa   : > { %1247 = vmatprep.subr.bf16.mxu1 %v1705_v1  ;;  %v1628_v1 = vcombine.low %v491_v53, %v495_v54  ;;  %v551_v47 = vld [vmem:[#allocation6 + $0x330] sm:$0xff] }
  0xac   : > { %1285 = vmatpush1.bf16.msra.mxu0 %v1690_v56  ;;  %v496_v56 = vld [vmem:[#allocation6 + $0x178] sm:$0xff] }
  0xad   : > { %1286 = vmatprep.subr.bf16.mxu0 %v1699_v59  ;;  %1248 = vmatpush1.bf16.msra.mxu1 %v1704_v5  ;;  %v1629_v59 = vcombine.high %v491_v53, %v495_v54  ;;  %v1630_v2 = vcombine.low %v492_v55, %v496_v56  ;;  %v507_v5 = vld [vmem:[#allocation6 + $0x1d0] sm:$0xff] }
  0xae   : > { %1299 = vmatprep.subr.bf16.mxu1 %v1589_v9  ;;  %v1636_v9 = vcombine.low %v499_v61, %v503_v62  ;;  %v555_v54 = vld [vmem:[#allocation6 + $0x350] sm:$0xff] }
  0xb0   : > { %1287 = vmatpush1.bf16.msra.mxu0 %v1698_v60  ;;  %v1631_v60 = vcombine.high %v492_v55, %v496_v56  ;;  %v559_v55 = vld [vmem:[#allocation6 + $0x370] sm:$0xff]  ;;  %v556_v56 = vld [vmem:[#allocation6 + $0x358] sm:$0xff] }
  0xb1   : > { %1288 = vmatprep.subr.bf16.mxu0 %v1707_v4  ;;  %v1639_v4 = vcombine.high %v500_v63, %v504_v0  ;;  %v567_v63 = vld [vmem:[#allocation6 + $0x3b0] sm:$0xff]  ;;  %v564_v0 = vld [vmem:[#allocation6 + $0x398] sm:$0xff] }
  0xb4   : > { %1289 = vmatpush1.bf16.msra.mxu0 %v1706_v3  ;;  %v1637_v3 = vcombine.high %v499_v61, %v503_v62  ;;  %v563_v62 = vld [vmem:[#allocation6 + $0x390] sm:$0xff] }
  0xb5   : > { %1340 = vmatprep.subr.bf16.mxu0 %v1591_v13  ;;  %v515_v13 = vld [vmem:[#allocation6 + $0x210] sm:$0xff] }
  0xec   : > { %v361_v14 = vpop.permute.xlu0 %360 }
 0x14a   : > { %v440_v15 = vpop.f32.mrb[0].mxu0 }
 0x14b   : > { %v441_v16 = vadd.f32 %v440_v15, %v361_v14  ;;  %v442_v17 = vpop.f32.mrb[1].mxu0  ;;  %v516_v15 = vld [vmem:[#allocation6 + $0x218] sm:$0xff] }
 0x14c   : > { %v443_v18 = vadd.f32 %v442_v17, %v361_v14  ;;  %v519_v14 = vld [vmem:[#allocation6 + $0x230] sm:$0xff]  ;;  %v1644_v17 = vcombine.low %v507_v5, %v511_v6 }
 0x14d   : > { %v445_v19 = vmax.f32 %v441_v16, 0.0  ;;  %v520_v16 = vld [vmem:[#allocation6 + $0x238] sm:$0xff] }
 0x14e   : > { %v446_v20 = vmax.f32 %v443_v18, 0.0  ;;  %v1646_v18 = vcombine.low %v508_v7, %v512_v8  ;;  %v1654_v27 = vcombine.low %v516_v15, %v520_v16 }
 0x14f   : > { %v2216_v26 = vpack.c.bf16 %v445_v19, %v445_v19  ;;  %v1653_v19 = vcombine.high %v515_v13, %v519_v14 }
 0x150   : > { %v448_v25 = vpack.c.bf16 %v446_v20, %v446_v20  ;;  %v1655_v20 = vcombine.high %v516_v15, %v520_v16  ;;  %v1381_v16 = vld [vmem:[%s2189_s28] sm:$0xff] }
 0x152   : > { %1249 = vmatprep.mubr.bf16.mxu1 %v448_v25  ;;  %1290 = vmatprep.mubr.bf16.mxu0 %v448_v25 }
 0x153   : > { %1250 = vmatmul.mubr.bf16.vlgmr.msra.gmra.mrb[0].mxu1 %v2216_v26  ;;  %1291 = vmatmul.mubr.bf16.vlgmr.msra.gmra.mrb[4].mxu0 %v2216_v26 }
 0x154   : > { %1300 = vmatpush1.bf16.msra.mxu1 %v1588_v11  ;;  %1341 = vmatpush1.bf16.msra.mxu0 %v1590_v12  ;;  %v1645_v11 = vcombine.high %v507_v5, %v511_v6  ;;  %v1647_v12 = vcombine.high %v508_v7, %v512_v8  ;;  %v571_v6 = vld [vmem:[#allocation6 + $0x3d0] sm:$0xff]  ;;  %v572_v8 = vld [vmem:[#allocation6 + $0x3d8] sm:$0xff] }
 0x155   : > { %1331 = vmatprep.mubr.bf16.mxu1 %v448_v25  ;;  %1372 = vmatprep.mubr.bf16.mxu0 %v448_v25  ;;  %v1652_v25 = vcombine.low %v515_v13, %v519_v14  ;;  %v575_v7 = vld [vmem:[#allocation6 + $0x3f0] sm:$0xff] }
 0x156   : > { %1301 = vmatprep.subr.bf16.mxu1 %v1597_v28  ;;  %1342 = vmatprep.subr.bf16.mxu0 %v1599_v29  ;;  %v1661_v28 = vcombine.high %v523_v21, %v527_v22  ;;  %v1663_v29 = vcombine.high %v524_v23, %v528_v24  ;;  %v1708_v14 = vcombine.low %v571_v6, %v575_v7 }
 0x158   : > { %1302 = vmatpush1.bf16.msra.mxu1 %v1596_v33  ;;  %1343 = vmatpush1.bf16.msra.mxu0 %v1598_v34  ;;  %v536_v33 = vld [vmem:[#allocation6 + $0x2b8] sm:$0xff]  ;;  %v1660_v34 = vcombine.low %v523_v21, %v527_v22  ;;  %v1398_v21 = vstv %s1580_s30 }
 0x159   : > { %1303 = vmatprep.subr.bf16.mxu1 %v1605_v35  ;;  %1344 = vmatprep.subr.bf16.mxu0 %v1607_v36  ;;  %v1662_v35 = vcombine.low %v524_v23, %v528_v24  ;;  %v1669_v36 = vcombine.high %v531_v30, %v535_v31  ;;  %v1671_v37 = vcombine.high %v532_v32, %v536_v33 }
 0x15c   : > { %1304 = vmatpush1.bf16.msra.mxu1 %v1604_v41  ;;  %1345 = vmatpush1.bf16.msra.mxu0 %v1606_v42  ;;  %v544_v41 = vld [vmem:[#allocation6 + $0x2f8] sm:$0xff]  ;;  %v1668_v42 = vcombine.low %v531_v30, %v535_v31 }
 0x15d   : > { %1305 = vmatprep.subr.bf16.mxu1 %v1613_v43  ;;  %1346 = vmatprep.subr.bf16.mxu0 %v1615_v44  ;;  %v1670_v43 = vcombine.low %v532_v32, %v536_v33  ;;  %v1677_v44 = vcombine.high %v539_v38, %v543_v39  ;;  %v1679_v45 = vcombine.high %v540_v40, %v544_v41 }
 0x160   : > { %1306 = vmatpush1.bf16.msra.mxu1 %v1612_v49  ;;  %1347 = vmatpush1.bf16.msra.mxu0 %v1614_v50  ;;  %v552_v49 = vld [vmem:[#allocation6 + $0x338] sm:$0xff]  ;;  %v1676_v50 = vcombine.low %v539_v38, %v543_v39 }
 0x161   : > { %1307 = vmatprep.subr.bf16.mxu1 %v1621_v51  ;;  %1348 = vmatprep.subr.bf16.mxu0 %v1623_v52  ;;  %v1678_v51 = vcombine.low %v540_v40, %v544_v41  ;;  %v1685_v52 = vcombine.high %v547_v46, %v551_v47  ;;  %v1687_v53 = vcombine.high %v548_v48, %v552_v49 }
 0x164   : > { %1308 = vmatpush1.bf16.msra.mxu1 %v1620_v57  ;;  %1349 = vmatpush1.bf16.msra.mxu0 %v1622_v58  ;;  %v560_v57 = vld [vmem:[#allocation6 + $0x378] sm:$0xff]  ;;  %v1684_v58 = vcombine.low %v547_v46, %v551_v47 }
 0x165   : > { %1309 = vmatprep.subr.bf16.mxu1 %v1629_v59  ;;  %1350 = vmatprep.subr.bf16.mxu0 %v1631_v60  ;;  %v1686_v59 = vcombine.low %v548_v48, %v552_v49  ;;  %v1693_v60 = vcombine.high %v555_v54, %v559_v55  ;;  %v1695_v61 = vcombine.high %v556_v56, %v560_v57 }
 0x168   : > { %1310 = vmatpush1.bf16.msra.mxu1 %v1628_v1  ;;  %1351 = vmatpush1.bf16.msra.mxu0 %v1630_v2  ;;  %v568_v1 = vld [vmem:[#allocation6 + $0x3b8] sm:$0xff]  ;;  %v1692_v2 = vcombine.low %v555_v54, %v559_v55 }
 0x169   : > { %1311 = vmatprep.subr.bf16.mxu1 %v1637_v3  ;;  %1352 = vmatprep.subr.bf16.mxu0 %v1639_v4  ;;  %v1694_v3 = vcombine.low %v556_v56, %v560_v57  ;;  %v1701_v4 = vcombine.high %v563_v62, %v567_v63  ;;  %v1703_v5 = vcombine.high %v564_v0, %v568_v1 }
 0x16c   : > { %1312 = vmatpush1.bf16.msra.mxu1 %v1636_v9  ;;  %1353 = vmatpush1.bf16.msra.mxu0 %v1638_v10  ;;  %v576_v9 = vld [vmem:[#allocation6 + $0x3f8] sm:$0xff]  ;;  %v1700_v10 = vcombine.low %v563_v62, %v567_v63 }
 0x16d   : > { %1313 = vmatprep.subr.bf16.mxu1 %v1645_v11  ;;  %1354 = vmatprep.subr.bf16.mxu0 %v1647_v12  ;;  %v1702_v11 = vcombine.low %v564_v0, %v568_v1  ;;  %v1709_v12 = vcombine.high %v571_v6, %v575_v7  ;;  %v1711_v13 = vcombine.high %v572_v8, %v576_v9 }
 0x16e   : > { %v1710_v15 = vcombine.low %v572_v8, %v576_v9 }
 0x170   : > { %1314 = vmatpush1.bf16.msra.mxu1 %v1644_v17  ;;  %1355 = vmatpush1.bf16.msra.mxu0 %v1646_v18  ;;  %v1389_v17 = vstv %s353_s16  ;;  %v1383_v18 = vld [vmem:[%s2189_s28 + $0x10] sm:$0xff] }
 0x171   : > { %1315 = vmatprep.subr.bf16.mxu1 %v1653_v19  ;;  %1356 = vmatprep.subr.bf16.mxu0 %v1655_v20  ;;  %v1382_v19 = vld [vmem:[%s2189_s28 + $0x8] sm:$0xff]  ;;  %v1384_v20 = vld [vmem:[%s2189_s28 + $0x18] sm:$0xff]  ;;  %v1390_v22 = vmul.f32 %v1389_v17, %v1381_v16  ;;  %v1392_v23 = vmul.f32 %v1389_v17, %v1383_v18 }
 0x174   : > { %1316 = vmatpush1.bf16.msra.mxu1 %v1652_v25  ;;  %1357 = vmatpush1.bf16.msra.mxu0 %v1654_v27  ;;  %v1391_v27 = vmul.f32 %v1389_v17, %v1382_v19 }
 0x175   : > { %1317 = vmatprep.subr.bf16.mxu1 %v1661_v28  ;;  %1358 = vmatprep.subr.bf16.mxu0 %v1663_v29  ;;  %v1393_v28 = vmul.f32 %v1389_v17, %v1384_v20 }
 0x178   : > { %1318 = vmatpush1.bf16.msra.mxu1 %v1660_v34  ;;  %1359 = vmatpush1.bf16.msra.mxu0 %v1662_v35 }
 0x179   : > { %1319 = vmatprep.subr.bf16.mxu1 %v1669_v36  ;;  %1360 = vmatprep.subr.bf16.mxu0 %v1671_v37 }
 0x17c   : > { %1320 = vmatpush1.bf16.msra.mxu1 %v1668_v42  ;;  %1361 = vmatpush1.bf16.msra.mxu0 %v1670_v43  ;;  %v1385_v42 = vld [vmem:[%s2189_s28 + $0x20] sm:$0xff]  ;;  %v1387_v43 = vld [vmem:[%s2189_s28 + $0x30] sm:$0xff] }
 0x17d   : > { %1321 = vmatprep.subr.bf16.mxu1 %v1677_v44  ;;  %1362 = vmatprep.subr.bf16.mxu0 %v1679_v45  ;;  %v1386_v44 = vld [vmem:[%s2189_s28 + $0x28] sm:$0xff]  ;;  %v1388_v45 = vld [vmem:[%s2189_s28 + $0x38] sm:$0xff]  ;;  %v1394_v46 = vmul.f32 %v1389_v17, %v1385_v42  ;;  %v1396_v47 = vmul.f32 %v1389_v17, %v1387_v43 }
 0x180   : > { %1322 = vmatpush1.bf16.msra.mxu1 %v1676_v50  ;;  %1363 = vmatpush1.bf16.msra.mxu0 %v1678_v51  ;;  %v1395_v50 = vmul.f32 %v1389_v17, %v1386_v44  ;;  %v1397_v51 = vmul.f32 %v1389_v17, %v1388_v45 }
 0x181   : > { %1323 = vmatprep.subr.bf16.mxu1 %v1685_v52  ;;  %1364 = vmatprep.subr.bf16.mxu0 %v1687_v53 }
 0x184   : > { %1324 = vmatpush1.bf16.msra.mxu1 %v1684_v58  ;;  %1365 = vmatpush1.bf16.msra.mxu0 %v1686_v59 }
 0x185   : > { %1325 = vmatprep.subr.bf16.mxu1 %v1693_v60  ;;  %1366 = vmatprep.subr.bf16.mxu0 %v1695_v61 }
 0x188   : > { %1326 = vmatpush1.bf16.msra.mxu1 %v1692_v2  ;;  %1367 = vmatpush1.bf16.msra.mxu0 %v1694_v3 }
 0x189   : > { %1327 = vmatprep.subr.bf16.mxu1 %v1701_v4  ;;  %1368 = vmatprep.subr.bf16.mxu0 %v1703_v5 }
 0x18c   : > { %1328 = vmatpush1.bf16.msra.mxu1 %v1700_v10  ;;  %1369 = vmatpush1.bf16.msra.mxu0 %v1702_v11 }
 0x18d   : > { %1329 = vmatprep.subr.bf16.mxu1 %v1709_v12  ;;  %1370 = vmatprep.subr.bf16.mxu0 %v1711_v13 }
 0x190   : > { %1330 = vmatpush1.bf16.msra.mxu1 %v1708_v14  ;;  %1371 = vmatpush1.bf16.msra.mxu0 %v1710_v15 }
 0x193   : > { %1332 = vmatmul.mubr.bf16.vlgmr.msra.gmra.mrb[4].mxu1 %v2216_v26  ;;  %1373 = vmatmul.mubr.bf16.vlgmr.msra.gmra.mrb[8].mxu0 %v2216_v26 }
 0x226   : > { %v1251_v24 = vpop.f32.mrb[0].mxu1  ;;  %v1292_v25 = vpop.f32.mrb[4].mxu0 }
 0x227   : > { %v1399_v29 = vmul.f32 %v1398_v21, %v1251_v24  ;;  %v1401_v30 = vmul.f32 %v1398_v21, %v1292_v25  ;;  %v1253_v31 = vpop.f32.mrb[1].mxu1  ;;  %v1294_v32 = vpop.f32.mrb[5].mxu0 }
 0x228   : > { %v1400_v26 = vmul.f32 %v1398_v21, %v1253_v31  ;;  %v1402_v33 = vmul.f32 %v1398_v21, %v1294_v32  ;;  %v1255_v34 = vpop.f32.mrb[2].mxu1  ;;  %v1296_v35 = vpop.f32.mrb[6].mxu0 }
 0x229   : > { %v1407_v36 = vadd.f32 %v1399_v29, %v1390_v22  ;;  %v1409_v37 = vadd.f32 %v1401_v30, %v1392_v23  ;;  %v1256_v38 = vpop.f32.mrb[3].mxu1  ;;  %v1297_v39 = vpop.f32.mrb[7].mxu0 }
 0x22a   : > { %v1408_v40 = vadd.f32 %v1400_v26, %v1391_v27  ;;  %v1410_v41 = vadd.f32 %v1402_v33, %v1393_v28 }
 0x22b   : > { %1415 = vst [vmem:[%s2228_s7] sm:$0xff] %v1407_v36  ;;  %1417 = vst [vmem:[%s2228_s7 + $0x10] sm:$0xff] %v1409_v37 }
 0x22c   : > { %1416 = vst [vmem:[%s2228_s7 + $0x8] sm:$0xff] %v1408_v40  ;;  %1418 = vst [vmem:[%s2228_s7 + $0x18] sm:$0xff] %v1410_v41 }
 0x266   : > { %v1333_v48 = vpop.f32.mrb[4].mxu1  ;;  %v1374_v49 = vpop.f32.mrb[8].mxu0 }
 0x267   : > { %v1403_v52 = vmul.f32 %v1398_v21, %v1333_v48  ;;  %v1405_v53 = vmul.f32 %v1398_v21, %v1374_v49  ;;  %v1335_v54 = vpop.f32.mrb[5].mxu1  ;;  %v1376_v55 = vpop.f32.mrb[9].mxu0 }
 0x268   : > { %v1404_v56 = vmul.f32 %v1398_v21, %v1335_v54  ;;  %v1406_v57 = vmul.f32 %v1398_v21, %v1376_v55  ;;  %v1337_v58 = vpop.f32.mrb[6].mxu1  ;;  %v1378_v59 = vpop.f32.mrb[10].mxu0 }
 0x269   : > { %v1411_v60 = vadd.f32 %v1403_v52, %v1394_v46  ;;  %v1413_v61 = vadd.f32 %v1405_v53, %v1396_v47  ;;  %v1338_v62 = vpop.f32.mrb[7].mxu1  ;;  %v1379_v63 = vpop.f32.mrb[11].mxu0 }
 0x26a   : > { %v1412_v0 = vadd.f32 %v1404_v56, %v1395_v50  ;;  %v1414_v1 = vadd.f32 %v1406_v57, %v1397_v51 }
 0x26b   : > { %1419 = vst [vmem:[%s2228_s7 + $0x20] sm:$0xff] %v1411_v60  ;;  %1421 = vst [vmem:[%s2228_s7 + $0x30] sm:$0xff] %v1413_v61 }
 0x26c   : > { %1420 = vst [vmem:[%s2228_s7 + $0x28] sm:$0xff] %v1412_v0  ;;  %1422 = vst [vmem:[%s2228_s7 + $0x38] sm:$0xff] %v1414_v1 }
 0x26d   : > { %1895 = shalt.err (!%p1892_p8)
}
 0x26e   : > { %s1896_s27 = scalar_lea.hbm %s2243_s29, 1024  ;;  %s1900_s30 = scalar_lea.hbm %s2302_s6, 2048 }
 0x26f   : > { %p1897_p13 = scmp.ne.s32.totalorder %s2243_s29, %s1896_s27  ;;  %p1901_p2 = scmp.lt.u32.totalorder %s2243_s29, %s2302_s6 }
 0x270   : > { %p1902_p11 = scmp.lt.u32.totalorder %s1900_s30, %s1896_s27  ;;  %p1904_p5 = scmp.lt.u32.totalorder %s1896_s27, %s2243_s29 }
 0x271   : > { %p1898_p0 = pnand %p1897_p13, %p2131_p12 }
 0x272   : > { %p1903_p3 = por %p1902_p11, %p1901_p2 }
 0x273   : > { %p1899_p6 = pneg %p1898_p0 }
 0x274   : > { %p1905_p7 = por %p1904_p5, %p1903_p3 }
 0x276   : > { %p1906_p9 = pnand %p1905_p7, %p1899_p6 }
 0x278   : > { %1909 = shalt.err (!%p1906_p9)
}
 0x279   : > { %1730 = dma.vmem_to_hbm [thread:$0]  (%p2131_p12), %s2245_s9, 1024, %s2243_s29, %s1424_s24  }
 0x27a PF: > { %s1452_s28 = sand.u32 1, %s1952_s21   ;;  %p2319_p10 = scmp.ne.s32.totalorder %s2310_s8, 0 }
 0x27b   : > { %p2320_p1 = scmp.ge.s32.totalorder %s1972_s26, 2  ;;  %s1453_s17 = scalar_lea.sflag [#allocation4], %s1452_s28 }
 0x27d   : > { %p1744_p4 = pnand %p2320_p1, %p2319_p10 }
 0x27f   : > { %1947 = dma.done.wait (!%p1744_p4), %s1453_s17, 1024  }
 0x280   : > { %1949 = vsyncadd (!%p1744_p4), %s1453_s17, 4294966272  ;;  %s24_s26 = sadd.s32 1, %s1972_s26   ;;  %s2321_s21 = smov %s1956_s22 }
 0x281   : > { %p21_p8 = scmp.ge.s32.totalorder %s24_s26, 4   ;;  %s2322_s22 = smov %s1960_s23 }
 0x282   : > { %s2323_s23 = smov %s2140_s12  ;;  %s2324_s24 = smov %s1968_s25 }
 0x283   : > { %s2325_s25 = smov %s2327_s11  ;;  %23 = sbr.rel (!%p21_p8) target bundleno = 8 (0x8), region = 101 }
 0x28a   :  { %1458 = vsyncpa [#allocation3], 1 }
 0x28b   :  { %1460 = vsyncpa [#allocation3 + $0x1], 1 }
 0x28c   :  { %1461 = vsyncpa [#allocation7], 1 }
 0x28d   :  { %1462 = vsyncpa [#allocation4], 1 }
 0x28e   :  { %1464 = vsyncpa [#allocation4 + $0x1], 1 }
 0x28f   :  { %1465 = vsyncpa [#allocation5], 1 }
 0x290   :  { %1467 = vsyncpa [#allocation5 + $0x1], 1 }

</bundles_post_ra>
